<compile_context>
chip_gen: v5e
topology: v5e:2x2
jax: 0.10.0
libtpu: 0.0.40
codegen_flags: <defaults>
</compile_context>

<pallas_src>
import jax
import jax.numpy as jnp
from jax.experimental import pallas as pl
from jax.experimental.pallas import tpu as pltpu


def _round_up(x, m):
    return (x + m - 1) // m * m


def _to_pred_len_kernel(x_ref, w_ref, b_ref, o_ref):
    # x_ref: [L, tn]   time x (flattened batch*channel) tile
    # w_ref: [P, L]    full Linear weight, VMEM-resident
    # b_ref: [P, 1]    bias (f32), VMEM-resident
    # o_ref: [P, tn]   output tile (lane-dense)
    acc = jnp.dot(w_ref[...], x_ref[...], preferred_element_type=jnp.float32)
    o_ref[...] = (acc + b_ref[...]).astype(o_ref.dtype)


def to_pred_len(x, weight, bias, *, compute_dtype=None):
    """x: [B, L, C]; weight: [pred_len, L]; bias: [pred_len] -> [B, pred_len, C].

    compute_dtype: if set (e.g. jnp.bfloat16), x and W are streamed in that
    dtype (half the HBM/VMEM bytes, bf16 MXU fast path on v6e/v7x); the
    accumulation, bias add and output stay f32 / x.dtype.
    """
    B, L, C = x.shape
    P = weight.shape[0]
    assert weight.shape == (P, L)
    out_dtype = x.dtype
    N = B * C

    # Reduced-precision streaming: cast BEFORE any relayout/padding so the
    # relayout copy also moves half the bytes.
    if compute_dtype is not None:
        x = x.astype(compute_dtype)
        weight = weight.astype(compute_dtype)

    # Fold batch into the lane axis: x2d[l, b*C + c] = x[b, l, c].
    x2d = jnp.transpose(x, (1, 0, 2)).reshape(L, N)
    b2d = bias.reshape(P, 1).astype(jnp.float32)

    # Lane tile over the flattened B*C axis.  Budgeted so (resident W, assumed
    # double-buffered) + (double-buffered x tile) + (double-buffered out tile)
    # stays well below even v5e's 16 MiB scoped-VMEM default (v6e/v7x default
    # is 32 MiB, so there is extra headroom there).
    bpe_in = jnp.dtype(x2d.dtype).itemsize
    budget = 12 * 1024 * 1024
    w_bytes = 2 * P * L * bpe_in
    per_col = 2 * (L * bpe_in + P * 4)      # x col + out col, double-buffered
    avail = budget - w_bytes
    tn_cap = 128
    if avail > 128 * per_col:
        tn_cap = max(128, min(1024, (avail // per_col) // 128 * 128))
    tn = min(_round_up(N, 128), tn_cap)
    N_pad = _round_up(N, tn)

    # The only padding: zero columns appended to the flattened B*C axis
    # (at most tn-1 of them), sliced off after the call.
    if N_pad != N:
        x2d = jnp.pad(x2d, ((0, 0), (0, N_pad - N)))

    grid = (N_pad // tn,)

    bytes_accessed = (L * N_pad * bpe_in            # x2d
                      + P * L * bpe_in              # W (fetched once)
                      + P * 4                       # bias
                      + P * N_pad * jnp.dtype(out_dtype).itemsize)

    out2d = pl.pallas_call(
        _to_pred_len_kernel,
        out_shape=jax.ShapeDtypeStruct((P, N_pad), out_dtype),
        grid_spec=pltpu.PrefetchScalarGridSpec(
            num_scalar_prefetch=0,
            grid=grid,
            in_specs=[
                # x2d tile: [L, tn], streamed along the B*C axis.
                pl.BlockSpec((L, tn), lambda n: (0, n)),
                # Full weight: constant block index -> fetched once, resident.
                pl.BlockSpec((P, L), lambda n: (0, 0)),
                # Bias: constant block index -> fetched once, resident.
                pl.BlockSpec((P, 1), lambda n: (0, 0)),
            ],
            out_specs=pl.BlockSpec((P, tn), lambda n: (0, n)),
        ),
        compiler_params=pltpu.CompilerParams(
            dimension_semantics=("parallel",)),
        cost_estimate=pl.CostEstimate(
            flops=2 * P * L * N_pad,
            transcendentals=0,
            bytes_accessed=bytes_accessed),
    )(x2d, weight, b2d)

    # [P, B*C] -> [B, P, C]
    out = out2d[:, :N].reshape(P, B, C).transpose(1, 0, 2)
    # TODO(synk): training-mode dropout (head_dropout > 0) would need
    # pltpu.prng_seed / prng_random_bits; with head_dropout=0 (eval semantics)
    # it is the identity and is omitted.
    return out


if __name__ == "__main__":
    key = jax.random.PRNGKey(0)
    k_x, k_w, k_b = jax.random.split(key, 3)

    # Small shapes consistent with the module: x [B, seq_len L, channels C].
    B, L, C = 2, 32, 4
    pred_len = 16

    x = jax.random.normal(k_x, (B, L, C), dtype=jnp.float32)
    # PyTorch nn.Linear(L, pred_len): weight [pred_len, L], bias [pred_len].
    weight = jax.random.normal(k_w, (pred_len, L), dtype=jnp.float32) * 0.05
    bias = jax.random.normal(k_b, (pred_len,), dtype=jnp.float32) * 0.05

    out = jax.block_until_ready(to_pred_len(x, weight, bias))

    # Plain-JAX reference of the PyTorch forward:
    #   (x.transpose(1,2) @ W.T + b).transpose(1,2)  ==  einsum over L.
    ref = jnp.einsum("blc,pl->bpc", x, weight) + bias[None, :, None]
    assert out.shape == (B, pred_len, C)
    assert jnp.allclose(out, ref, atol=1e-5, rtol=1e-5)

    # bf16-streaming fast path (v6e/v7x MXU, bandwidth win on v5e);
    # f32 accumulation -> loose tolerance reflects input rounding only.
    out_bf16 = jax.block_until_ready(
        to_pred_len(x, weight, bias, compute_dtype=jnp.bfloat16))
    assert jnp.allclose(out_bf16, ref, atol=5e-2, rtol=5e-2)

    print("KERNEL_OK")
</pallas_src>

<mosaic_0001>
module attributes {stable_mosaic.version = 11 : i64} {
  func.func @_to_pred_len_kernel(%arg0: i32, %arg1: memref<32x128xf32, #tpu.memory_space<vmem>>, %arg2: memref<16x32xf32, #tpu.memory_space<vmem>>, %arg3: memref<16x1xf32, #tpu.memory_space<vmem>>, %arg4: memref<16x128xf32, #tpu.memory_space<vmem>>) attributes {dimension_semantics = [#tpu.dimension_semantics<parallel>], iteration_bounds = array<i64: 1>, scalar_prefetch = 0 : i64, scratch_operands = 0 : i64, tpu.core_type = #tpu.core_type<tc>, window_params = [{transform_indices = @transform_0, window_bounds = array<i64: 32, 128>}, {pipeline_mode = #tpu.pipeline_mode<synchronous>, transform_indices = @transform_1, window_bounds = array<i64: 16, 32>}, {pipeline_mode = #tpu.pipeline_mode<synchronous>, transform_indices = @transform_2, window_bounds = array<i64: 16, 1>}, {transform_indices = @transform_3, window_bounds = array<i64: 16, 128>}]} {
    %c0 = arith.constant 0 : index
    %c0_0 = arith.constant 0 : index
    %0 = vector.load %arg2[%c0, %c0_0] : memref<16x32xf32, #tpu.memory_space<vmem>>, vector<16x32xf32>
    %c0_1 = arith.constant 0 : index
    %c0_2 = arith.constant 0 : index
    %1 = vector.load %arg1[%c0_1, %c0_2] : memref<32x128xf32, #tpu.memory_space<vmem>>, vector<32x128xf32>
    %cst = arith.constant dense<0.000000e+00> : vector<16x128xf32>
    %2 = tpu.matmul %0, %1, %cst {dimension_numbers = #tpu.dot_dimension_numbers<[1], [0], [0], [1], [0, 0, 1, 1], [], []>} : vector<16x32xf32>, vector<32x128xf32>, vector<16x128xf32> -> vector<16x128xf32>
    %c0_3 = arith.constant 0 : index
    %c0_4 = arith.constant 0 : index
    %3 = vector.load %arg3[%c0_3, %c0_4] : memref<16x1xf32, #tpu.memory_space<vmem>>, vector<16x1xf32>
    %4 = vector.broadcast %3 : vector<16x1xf32> to vector<16x128xf32>
    %5 = arith.addf %2, %4 : vector<16x128xf32>
    %c0_5 = arith.constant 0 : index
    %c0_6 = arith.constant 0 : index
    %6 = vector.load %arg4[%c0_5, %c0_6] : memref<16x128xf32, #tpu.memory_space<vmem>>, vector<16x128xf32>
    tpu.vector_store %arg4[%c0_5, %c0_6], %5 {strides = array<i32>} : memref<16x128xf32, #tpu.memory_space<vmem>>, vector<16x128xf32>,
    return
  }
  func.func @transform_0(%arg0: i32) -> (i32, i32) {
    %c0_i32 = arith.constant 0 : i32
    %c0_i32_0 = arith.constant 0 : i32
    return %c0_i32, %arg0 : i32, i32
  }
  func.func @transform_1(%arg0: i32) -> (i32, i32) {
    %c0_i32 = arith.constant 0 : i32
    %c0_i32_0 = arith.constant 0 : i32
    %c0_i32_1 = arith.constant 0 : i32
    return %c0_i32, %c0_i32_0 : i32, i32
  }
  func.func @transform_2(%arg0: i32) -> (i32, i32) {
    %c0_i32 = arith.constant 0 : i32
    %c0_i32_0 = arith.constant 0 : i32
    %c0_i32_1 = arith.constant 0 : i32
    return %c0_i32, %c0_i32_0 : i32, i32
  }
  func.func @transform_3(%arg0: i32) -> (i32, i32) {
    %c0_i32 = arith.constant 0 : i32
    %c0_i32_0 = arith.constant 0 : i32
    return %c0_i32, %arg0 : i32, i32
  }
}

</mosaic_0001>

<bundles_post_ra>
// kernel: tpu_custom_call.1
= control target key start
LH: loop header
LB: loop body
LE: loop exit
PB: predicated region body
PF: predicated region fallthrough
CT: control target
= control target key end

     0   :  { %8 = vsyncpa [#allocation3], 0  ;;  %s213_s0 = inlined_call_operand.hbm [shape: f32[32,128], index: 0, kind: input, shape index: {}]   ;;  %s214_s1 = inlined_call_operand.vmem [shape: f32[16,32], index: 1, kind: input, shape index: {}]   ;;  %s215_s2 = inlined_call_operand.vmem [shape: f32[16,1], index: 2, kind: input, shape index: {}]   ;;  %s216_s3 = inlined_call_operand.hbm [shape: f32[16,128], index: 3, kind: output, shape index: {}]  }
   0x1   :  { %9 = vsyncpa [#allocation4], 0  ;;  %s14_s14 = sshll.u32 %s213_s0, 4  ;;  %s164_s15 = smov [#allocation2]   ;;  %s15_s14 = int_to_ptr.hbm [resolvable:$true] %s14_s14 }
   0x2   :  { %s16_s16 = sshll.u32 %s164_s15, 4  ;;  %s165_s17 = smov 128   ;;  %s17_s16 = int_to_ptr.vmem [resolvable:$true] %s16_s16 }
   0x3   :  { %s166_s18 = smov 8  }
   0x4   :  { %22 = dma.hbm_to_vmem [thread:$0]  %s15_s14, 512, %s17_s16, [#allocation3], %s165_s17, %s165_s17, %s166_s18  }
   0x5   :  { %160 = dma.done.wait [#allocation3], 512  }
   0x6   :  { %161 = vsyncadd [#allocation3], 4294966784  ;;  %v167_v0 = vmov 0   ;;  %v36_v1 = vld [vmem:[#allocation2 + $0x18] sm:$0xff]  ;;  %v37_v2 = vld [vmem:[%s215_s2] sm:$0xff]  ;;  %vm49_vm0 = vcmask 261120  }
   0x7   :  { %111 = vset.pattern.permute.xlu0 %v167_v0  ;;  %v35_v3 = vld [vmem:[#allocation2 + $0x10] sm:$0xff]  ;;  %68 = vmatpush.msra.mxu0 %v36_v1  ;;  %v34_v4 = vld [vmem:[#allocation2 + $0x8] sm:$0xff]  ;;  %v33_v5 = vld [vmem:[#allocation2] sm:$0xff]  ;;  %s168_s26 = smov [#allocation5]   ;;  %s87_s30 = sshll.u32 %s216_s3, 4  ;;  %s88_s30 = int_to_ptr.hbm [resolvable:$true] %s87_s30 }
   0x8   :  { %102 = vmatpush.msra.mxu1 %v36_v1  ;;  %41 = vperm.xlu0 %111, %v37_v2   ;;  %v31_v6 = vld [vmem:[%s214_s1] sm:$0xff]  ;;  %v32_v7 = vld [vmem:[%s214_s1 + $0x8] sm:$0xff]  ;;  %s85_s27 = sshll.u32 %s168_s26, 4  ;;  %s86_s27 = int_to_ptr.vmem [resolvable:$true] %s85_s27 }
   0x9   :  { %69 = vmatpush.msra.mxu0 %v35_v3  ;;  %v38_v8 = vld [vmem:[%s215_s2 + $0x8] sm:$0xff] }
   0xa   :  { %103 = vmatpush.msra.mxu1 %v35_v3 }
   0xb   :  { %70 = vmatpush.msra.mxu0 %v34_v4 }
   0xc   :  { %104 = vmatpush.msra.mxu1 %v34_v4 }
   0xd   :  { %71 = vmatpush.msra.mxu0 %v33_v5 }
   0xe   :  { %105 = vmatpush.msra.mxu1 %v33_v5  ;;  %100 = vmatmul.msk.f32.vlgmr.msra.gmra.mxu0 %vm49_vm0, %v31_v6 }
   0xf   :  { %101 = vmatmul.msk.f32.vlgmr.msra.gmra.mxu1 %vm49_vm0, %v32_v7 }
  0x10   :  { %46 = vperm.xlu0 %111, %v38_v8  }
  0x7a   :  { %v42_v9 = vpop.permute.xlu0 %41 }
  0x82   :  { %v47_v10 = vpop.permute.xlu0 %46 }
  0x8b   :  { %v73_v11 = vpop.f32.mrf.mxu0 }
  0x8c   :  { %v76_v12 = vpop.f32.mrf.mxu1  ;;  %v74_v13 = vadd.f32 %v73_v11, %v42_v9 }
  0x8d   :  { %v77_v14 = vadd.f32 %v76_v12, %v47_v10 }
  0x8e   :  { %79 = vst [vmem:[#allocation5] sm:$0xff] %v74_v13 }
  0x8f   :  { %80 = vst [vmem:[#allocation5 + $0x8] sm:$0xff] %v77_v14 }
  0x90   :  { %93 = dma.vmem_to_hbm [thread:$0]  %s86_s27, 256, %s88_s30, [#allocation4], %s165_s17, %s165_s17, %s166_s18  }
  0x91   :  { %162 = dma.done.wait [#allocation4], 256  }
  0x92   :  { %163 = vsyncadd [#allocation4], 4294967040 }
  0x93   :  { %98 = vsyncpa [#allocation3], 1 }
  0x94   :  { %99 = vsyncpa [#allocation4], 1 }

</bundles_post_ra>
